<compile_context>
chip_gen: v5e
topology: v5e:2x2
jax: 0.10.0
libtpu: 0.0.40
codegen_flags: <defaults>
</compile_context>

<pallas_src>
import jax
import jax.numpy as jnp
from jax.experimental import pallas as pl
from jax.experimental.pallas import tpu as pltpu


def _round_up(x, m):
    return ((x + m - 1) // m) * m


def _complex_kernel(hh_ref, hr_ref, ht_ref, ih_ref, ir_ref, it_ref,
                    wh_ref, wr_ref, wt_ref, aff_ref, out_ref):
    """One batch tile of the ComplEx forward.

    hh/hr/ht_ref : [bb, E]  real-branch inputs (stream dtype)
    ih/ir/it_ref : [bb, H]  gathered imaginary embeddings (stream dtype)
    w*_ref       : [E, H]   fc_head / fc_rel / fc_tail weights (resident)
    aff_ref      : [8, H]   rows = [b_head, b_rel, b_tail,
                                    bn0_scale, bn0_shift, bn1_scale, bn1_shift, 0]
    out_ref      : [1, bb]  sigmoid(score), lane-dense
    """
    f32 = jnp.float32
    H = wh_ref.shape[1]

    b_h = aff_ref[0:1, :]
    b_r = aff_ref[1:2, :]
    b_t = aff_ref[2:3, :]
    s0, t0 = aff_ref[3:4, :], aff_ref[4:5, :]
    s1, t1 = aff_ref[5:6, :], aff_ref[6:7, :]

    def real_branch(x_ref, w_ref, b):
        # fc -> sigmoid -> folded eval-mode bn0 (dropout = identity in eval).
        z = jnp.dot(x_ref[...], w_ref[...], preferred_element_type=f32) + b
        return jax.nn.sigmoid(z) * s0 + t0

    a_h = real_branch(hh_ref, wh_ref, b_h)
    a_r = real_branch(hr_ref, wr_ref, b_r)
    a_t = real_branch(ht_ref, wt_ref, b_t)

    # Imaginary embeddings: folded eval-mode bn1 (dropout = identity in eval).
    i_h = ih_ref[...].astype(f32) * s1 + t1
    i_r = ir_ref[...].astype(f32) * s1 + t1
    i_t = it_ref[...].astype(f32) * s1 + t1

    # ComplEx score Re(<h, r, conj(t)>) per row, per feature.
    term = (a_h * a_r * a_t
            + a_h * i_r * i_t
            + i_h * a_r * i_t
            - i_h * i_r * a_t)                                    # [bb, H]

    # Feature reduction as ones(1,H) . term^T on the idle MXU -> lane-dense
    # [1, bb] result (no masked single-lane column store, no relayout).
    ones_row = jnp.ones((1, H), f32)
    pred = jax.lax.dot_general(ones_row, term,
                               dimension_numbers=(((1,), (1,)), ((), ())),
                               preferred_element_type=f32)        # [1, bb]
    out_ref[...] = jax.nn.sigmoid(pred)


def pack_params(p, eps=1e-5, stream_dtype=jnp.float32):
    """Fold eval-mode BatchNorm into scale/shift and pack resident arrays."""
    H = p["w_head"].shape[1]
    s0 = p["bn0_gamma"] / jnp.sqrt(p["bn0_var"] + eps)
    t0 = p["bn0_beta"] - p["bn0_mean"] * s0
    s1 = p["bn1_gamma"] / jnp.sqrt(p["bn1_var"] + eps)
    t1 = p["bn1_beta"] - p["bn1_mean"] * s1
    aff = jnp.stack(
        [p["b_head"], p["b_rel"], p["b_tail"], s0, t0, s1, t1,
         jnp.zeros((H,), jnp.float32)],
        axis=0).astype(jnp.float32)                               # [8, H]
    return {
        "w_head": p["w_head"].astype(stream_dtype),
        "w_rel": p["w_rel"].astype(stream_dtype),
        "w_tail": p["w_tail"].astype(stream_dtype),
        "aff": aff,
        "Ei": p["Ei"].astype(stream_dtype),
        "Ri": p["Ri"].astype(stream_dtype),
    }


def complex_forward(h_head, h_rel, h_tail, head_idx, rel_idx, tail_idx, packed,
                    *, block_b=2048):
    B, E = h_head.shape
    H = packed["w_head"].shape[1]
    sdt = packed["w_head"].dtype

    # Six separate pipelined inputs; no wrapper concatenation.
    ei_h = jnp.take(packed["Ei"], head_idx, axis=0)
    ri_r = jnp.take(packed["Ri"], rel_idx, axis=0)
    ei_t = jnp.take(packed["Ei"], tail_idx, axis=0)
    hh = h_head.astype(sdt)
    hr = h_rel.astype(sdt)
    ht = h_tail.astype(sdt)

    # Batch tile selection:
    #   - at most block_b rows (kept a multiple of 128),
    #   - split into >=2 grid steps when there is enough work (v7x 2-TC),
    #   - always a multiple of 8 sublanes; lane-dense output blocks are either
    #     the full (padded) extent or a multiple of 128 lanes.
    block_b = max(128, _round_up(block_b, 128))
    b_pad8 = _round_up(B, 8)
    half = _round_up(pl.cdiv(B, 2), 128)
    if half < b_pad8:
        bb = min(block_b, half)
    else:
        bb = b_pad8                       # small batch: single (padded) tile
    num_tiles = pl.cdiv(B, bb)

    act_spec = pl.BlockSpec((bb, E), lambda i: (i, 0))
    emb_spec = pl.BlockSpec((bb, H), lambda i: (i, 0))

    def resident(shape):
        return pl.BlockSpec(shape, lambda i: (0, 0))

    out = pl.pallas_call(
        _complex_kernel,
        out_shape=jax.ShapeDtypeStruct((1, num_tiles * bb), jnp.float32),
        grid_spec=pltpu.PrefetchScalarGridSpec(
            num_scalar_prefetch=0,
            grid=(num_tiles,),
            in_specs=[act_spec, act_spec, act_spec,
                      emb_spec, emb_spec, emb_spec,
                      resident((E, H)), resident((E, H)), resident((E, H)),
                      resident(packed["aff"].shape)],
            out_specs=pl.BlockSpec((1, bb), lambda i: (0, i)),
        ),
        compiler_params=pltpu.CompilerParams(
            dimension_semantics=("parallel",)),
    )(hh, hr, ht, ei_h, ri_r, ei_t,
      packed["w_head"], packed["w_rel"], packed["w_tail"], packed["aff"])

    return out[0, :B]                                             # torch returns [B]


def init_params(key, embedding_dim, hidden_dim, num_entities, num_relations):
    ks = jax.random.split(key, 13)
    p = {}
    # nn.Linear: weight ~ N(0,1), bias = 0 (per _init_weights); stored [in, out].
    p["w_head"] = jax.random.normal(ks[0], (embedding_dim, hidden_dim), jnp.float32)
    p["w_rel"] = jax.random.normal(ks[1], (embedding_dim, hidden_dim), jnp.float32)
    p["w_tail"] = jax.random.normal(ks[2], (embedding_dim, hidden_dim), jnp.float32)
    p["b_head"] = jnp.zeros((hidden_dim,), jnp.float32)
    p["b_rel"] = jnp.zeros((hidden_dim,), jnp.float32)
    p["b_tail"] = jnp.zeros((hidden_dim,), jnp.float32)
    # nn.Embedding default init ~ N(0,1).
    p["Ei"] = jax.random.normal(ks[3], (num_entities, hidden_dim), jnp.float32)
    p["Ri"] = jax.random.normal(ks[4], (num_relations, hidden_dim), jnp.float32)
    # BatchNorm1d eval-mode state (non-default values to exercise the path).
    p["bn0_gamma"] = 1.0 + 0.1 * jax.random.normal(ks[5], (hidden_dim,), jnp.float32)
    p["bn0_beta"] = 0.1 * jax.random.normal(ks[6], (hidden_dim,), jnp.float32)
    p["bn0_mean"] = 0.1 * jax.random.normal(ks[7], (hidden_dim,), jnp.float32)
    p["bn0_var"] = jax.random.uniform(ks[8], (hidden_dim,), jnp.float32, 0.5, 1.5)
    p["bn1_gamma"] = 1.0 + 0.1 * jax.random.normal(ks[9], (hidden_dim,), jnp.float32)
    p["bn1_beta"] = 0.1 * jax.random.normal(ks[10], (hidden_dim,), jnp.float32)
    p["bn1_mean"] = 0.1 * jax.random.normal(ks[11], (hidden_dim,), jnp.float32)
    p["bn1_var"] = jax.random.uniform(ks[12], (hidden_dim,), jnp.float32, 0.5, 1.5)
    return p


def _reference(h_head, h_rel, h_tail, head_idx, rel_idx, tail_idx, p, eps=1e-5):
    def bn(x, g, b, m, v):
        return (x - m) / jnp.sqrt(v + eps) * g + b

    hh = jax.nn.sigmoid(h_head @ p["w_head"] + p["b_head"])
    hr = jax.nn.sigmoid(h_rel @ p["w_rel"] + p["b_rel"])
    ht = jax.nn.sigmoid(h_tail @ p["w_tail"] + p["b_tail"])
    head_i = p["Ei"][head_idx]
    rel_i = p["Ri"][rel_idx]
    tail_i = p["Ei"][tail_idx]
    hh = bn(hh, p["bn0_gamma"], p["bn0_beta"], p["bn0_mean"], p["bn0_var"])
    hr = bn(hr, p["bn0_gamma"], p["bn0_beta"], p["bn0_mean"], p["bn0_var"])
    ht = bn(ht, p["bn0_gamma"], p["bn0_beta"], p["bn0_mean"], p["bn0_var"])
    head_i = bn(head_i, p["bn1_gamma"], p["bn1_beta"], p["bn1_mean"], p["bn1_var"])
    rel_i = bn(rel_i, p["bn1_gamma"], p["bn1_beta"], p["bn1_mean"], p["bn1_var"])
    tail_i = bn(tail_i, p["bn1_gamma"], p["bn1_beta"], p["bn1_mean"], p["bn1_var"])
    # dropout(p=0.1) is identity in eval mode
    rrr = jnp.sum(hh * hr * ht, axis=1)
    rii = jnp.sum(hh * rel_i * tail_i, axis=1)
    iri = jnp.sum(head_i * hr * tail_i, axis=1)
    iir = jnp.sum(head_i * rel_i * ht, axis=1)
    return jax.nn.sigmoid(rrr + rii + iri - iir)


if __name__ == "__main__":
    embedding_dim, hidden_dim = 32, 32
    num_entities, num_relations = 40, 12

    key = jax.random.PRNGKey(0)
    k_params, k_small, k_big = jax.random.split(key, 3)

    params = init_params(k_params, embedding_dim, hidden_dim,
                         num_entities, num_relations)
    packed = pack_params(params)                                   # f32 streaming
    packed_bf16 = pack_params(params, stream_dtype=jnp.bfloat16)   # bf16 streaming

    def make_inputs(k, batch):
        kh, kr, kt, k1, k2, k3 = jax.random.split(k, 6)
        return (jax.random.normal(kh, (batch, embedding_dim), jnp.float32),
                jax.random.normal(kr, (batch, embedding_dim), jnp.float32),
                jax.random.normal(kt, (batch, embedding_dim), jnp.float32),
                jax.random.randint(k1, (batch,), 0, num_entities),
                jax.random.randint(k2, (batch,), 0, num_relations),
                jax.random.randint(k3, (batch,), 0, num_entities))

    # 1) Small batch (single padded tile) — numerical check vs pure-JAX reference.
    small = make_inputs(k_small, 8)
    out_small = complex_forward(*small, packed)
    jax.block_until_ready(out_small)
    ref_small = _reference(*small, params)
    assert out_small.shape == (8,)
    assert jnp.allclose(out_small, ref_small, atol=5e-4, rtol=5e-4), \
        float(jnp.max(jnp.abs(out_small - ref_small)))

    # 2) Non-multiple batch (2 grid steps, padded last tile) — exercises the grid.
    big = make_inputs(k_big, 300)
    out_big = complex_forward(*big, packed)
    jax.block_until_ready(out_big)
    ref_big = _reference(*big, params)
    assert out_big.shape == (300,)
    assert jnp.allclose(out_big, ref_big, atol=5e-4, rtol=5e-4), \
        float(jnp.max(jnp.abs(out_big - ref_big)))

    # 3) bf16-streamed variant: smoke test (compiles, runs, finite, right shape).
    out_bf16 = complex_forward(*big, packed_bf16)
    jax.block_until_ready(out_bf16)
    assert out_bf16.shape == (300,)
    assert bool(jnp.all(jnp.isfinite(out_bf16)))

    print("KERNEL_OK")
</pallas_src>

<mosaic_0001>
module attributes {stable_mosaic.version = 11 : i64} {
  func.func @_complex_kernel(%arg0: i32, %arg1: memref<8x32xf32, #tpu.memory_space<vmem>>, %arg2: memref<8x32xf32, #tpu.memory_space<vmem>>, %arg3: memref<8x32xf32, #tpu.memory_space<vmem>>, %arg4: memref<8x32xf32, #tpu.memory_space<vmem>>, %arg5: memref<8x32xf32, #tpu.memory_space<vmem>>, %arg6: memref<8x32xf32, #tpu.memory_space<vmem>>, %arg7: memref<32x32xf32, #tpu.memory_space<vmem>>, %arg8: memref<32x32xf32, #tpu.memory_space<vmem>>, %arg9: memref<32x32xf32, #tpu.memory_space<vmem>>, %arg10: memref<8x32xf32, #tpu.memory_space<vmem>>, %arg11: memref<1x8xf32, #tpu.memory_space<vmem>>) attributes {dimension_semantics = [#tpu.dimension_semantics<parallel>], iteration_bounds = array<i64: 1>, scalar_prefetch = 0 : i64, scratch_operands = 0 : i64, tpu.core_type = #tpu.core_type<tc>, window_params = [{transform_indices = @transform_0, window_bounds = array<i64: 8, 32>}, {transform_indices = @transform_1, window_bounds = array<i64: 8, 32>}, {transform_indices = @transform_2, window_bounds = array<i64: 8, 32>}, {transform_indices = @transform_3, window_bounds = array<i64: 8, 32>}, {transform_indices = @transform_4, window_bounds = array<i64: 8, 32>}, {transform_indices = @transform_5, window_bounds = array<i64: 8, 32>}, {pipeline_mode = #tpu.pipeline_mode<synchronous>, transform_indices = @transform_6, window_bounds = array<i64: 32, 32>}, {pipeline_mode = #tpu.pipeline_mode<synchronous>, transform_indices = @transform_7, window_bounds = array<i64: 32, 32>}, {pipeline_mode = #tpu.pipeline_mode<synchronous>, transform_indices = @transform_8, window_bounds = array<i64: 32, 32>}, {pipeline_mode = #tpu.pipeline_mode<synchronous>, transform_indices = @transform_9, window_bounds = array<i64: 8, 32>}, {transform_indices = @transform_10, window_bounds = array<i64: 1, 8>}]} {
    %c0 = arith.constant 0 : index
    %c0_0 = arith.constant 0 : index
    %0 = vector.load %arg10[%c0, %c0_0] : memref<8x32xf32, #tpu.memory_space<vmem>>, vector<1x32xf32>
    %c1 = arith.constant 1 : index
    %c0_1 = arith.constant 0 : index
    %1 = vector.load %arg10[%c1, %c0_1] : memref<8x32xf32, #tpu.memory_space<vmem>>, vector<1x32xf32>
    %c2 = arith.constant 2 : index
    %c0_2 = arith.constant 0 : index
    %2 = vector.load %arg10[%c2, %c0_2] : memref<8x32xf32, #tpu.memory_space<vmem>>, vector<1x32xf32>
    %c3 = arith.constant 3 : index
    %c0_3 = arith.constant 0 : index
    %3 = vector.load %arg10[%c3, %c0_3] : memref<8x32xf32, #tpu.memory_space<vmem>>, vector<1x32xf32>
    %c4 = arith.constant 4 : index
    %c0_4 = arith.constant 0 : index
    %4 = vector.load %arg10[%c4, %c0_4] : memref<8x32xf32, #tpu.memory_space<vmem>>, vector<1x32xf32>
    %c5 = arith.constant 5 : index
    %c0_5 = arith.constant 0 : index
    %5 = vector.load %arg10[%c5, %c0_5] : memref<8x32xf32, #tpu.memory_space<vmem>>, vector<1x32xf32>
    %c6 = arith.constant 6 : index
    %c0_6 = arith.constant 0 : index
    %6 = vector.load %arg10[%c6, %c0_6] : memref<8x32xf32, #tpu.memory_space<vmem>>, vector<1x32xf32>
    %c0_7 = arith.constant 0 : index
    %c0_8 = arith.constant 0 : index
    %7 = vector.load %arg1[%c0_7, %c0_8] : memref<8x32xf32, #tpu.memory_space<vmem>>, vector<8x32xf32>
    %c0_9 = arith.constant 0 : index
    %c0_10 = arith.constant 0 : index
    %8 = vector.load %arg7[%c0_9, %c0_10] : memref<32x32xf32, #tpu.memory_space<vmem>>, vector<32x32xf32>
    %cst = arith.constant dense<0.000000e+00> : vector<8x32xf32>
    %9 = tpu.matmul %7, %8, %cst {dimension_numbers = #tpu.dot_dimension_numbers<[1], [0], [0], [1], [0, 0, 1, 1], [], []>} : vector<8x32xf32>, vector<32x32xf32>, vector<8x32xf32> -> vector<8x32xf32>
    %10 = vector.broadcast %0 : vector<1x32xf32> to vector<8x32xf32>
    %11 = arith.addf %9, %10 : vector<8x32xf32>
    %12 = arith.negf %11 : vector<8x32xf32>
    %13 = math.exp %12 : vector<8x32xf32>
    %cst_11 = arith.constant 1.000000e+00 : f32
    %14 = vector.broadcast %cst_11 : f32 to vector<8x32xf32>
    %15 = arith.addf %14, %13 : vector<8x32xf32>
    %16 = arith.divf %14, %15 : vector<8x32xf32>
    %17 = vector.broadcast %3 : vector<1x32xf32> to vector<8x32xf32>
    %18 = arith.mulf %16, %17 : vector<8x32xf32>
    %19 = vector.broadcast %4 : vector<1x32xf32> to vector<8x32xf32>
    %20 = arith.addf %18, %19 : vector<8x32xf32>
    %c0_12 = arith.constant 0 : index
    %c0_13 = arith.constant 0 : index
    %21 = vector.load %arg2[%c0_12, %c0_13] : memref<8x32xf32, #tpu.memory_space<vmem>>, vector<8x32xf32>
    %c0_14 = arith.constant 0 : index
    %c0_15 = arith.constant 0 : index
    %22 = vector.load %arg8[%c0_14, %c0_15] : memref<32x32xf32, #tpu.memory_space<vmem>>, vector<32x32xf32>
    %cst_16 = arith.constant dense<0.000000e+00> : vector<8x32xf32>
    %23 = tpu.matmul %21, %22, %cst_16 {dimension_numbers = #tpu.dot_dimension_numbers<[1], [0], [0], [1], [0, 0, 1, 1], [], []>} : vector<8x32xf32>, vector<32x32xf32>, vector<8x32xf32> -> vector<8x32xf32>
    %24 = vector.broadcast %1 : vector<1x32xf32> to vector<8x32xf32>
    %25 = arith.addf %23, %24 : vector<8x32xf32>
    %26 = arith.negf %25 : vector<8x32xf32>
    %27 = math.exp %26 : vector<8x32xf32>
    %cst_17 = arith.constant 1.000000e+00 : f32
    %28 = vector.broadcast %cst_17 : f32 to vector<8x32xf32>
    %29 = arith.addf %28, %27 : vector<8x32xf32>
    %30 = arith.divf %28, %29 : vector<8x32xf32>
    %31 = vector.broadcast %3 : vector<1x32xf32> to vector<8x32xf32>
    %32 = arith.mulf %30, %31 : vector<8x32xf32>
    %33 = vector.broadcast %4 : vector<1x32xf32> to vector<8x32xf32>
    %34 = arith.addf %32, %33 : vector<8x32xf32>
    %c0_18 = arith.constant 0 : index
    %c0_19 = arith.constant 0 : index
    %35 = vector.load %arg3[%c0_18, %c0_19] : memref<8x32xf32, #tpu.memory_space<vmem>>, vector<8x32xf32>
    %c0_20 = arith.constant 0 : index
    %c0_21 = arith.constant 0 : index
    %36 = vector.load %arg9[%c0_20, %c0_21] : memref<32x32xf32, #tpu.memory_space<vmem>>, vector<32x32xf32>
    %cst_22 = arith.constant dense<0.000000e+00> : vector<8x32xf32>
    %37 = tpu.matmul %35, %36, %cst_22 {dimension_numbers = #tpu.dot_dimension_numbers<[1], [0], [0], [1], [0, 0, 1, 1], [], []>} : vector<8x32xf32>, vector<32x32xf32>, vector<8x32xf32> -> vector<8x32xf32>
    %38 = vector.broadcast %2 : vector<1x32xf32> to vector<8x32xf32>
    %39 = arith.addf %37, %38 : vector<8x32xf32>
    %40 = arith.negf %39 : vector<8x32xf32>
    %41 = math.exp %40 : vector<8x32xf32>
    %cst_23 = arith.constant 1.000000e+00 : f32
    %42 = vector.broadcast %cst_23 : f32 to vector<8x32xf32>
    %43 = arith.addf %42, %41 : vector<8x32xf32>
    %44 = arith.divf %42, %43 : vector<8x32xf32>
    %45 = vector.broadcast %3 : vector<1x32xf32> to vector<8x32xf32>
    %46 = arith.mulf %44, %45 : vector<8x32xf32>
    %47 = vector.broadcast %4 : vector<1x32xf32> to vector<8x32xf32>
    %48 = arith.addf %46, %47 : vector<8x32xf32>
    %c0_24 = arith.constant 0 : index
    %c0_25 = arith.constant 0 : index
    %49 = vector.load %arg4[%c0_24, %c0_25] : memref<8x32xf32, #tpu.memory_space<vmem>>, vector<8x32xf32>
    %50 = vector.broadcast %5 : vector<1x32xf32> to vector<8x32xf32>
    %51 = arith.mulf %49, %50 : vector<8x32xf32>
    %52 = vector.broadcast %6 : vector<1x32xf32> to vector<8x32xf32>
    %53 = arith.addf %51, %52 : vector<8x32xf32>
    %c0_26 = arith.constant 0 : index
    %c0_27 = arith.constant 0 : index
    %54 = vector.load %arg5[%c0_26, %c0_27] : memref<8x32xf32, #tpu.memory_space<vmem>>, vector<8x32xf32>
    %55 = vector.broadcast %5 : vector<1x32xf32> to vector<8x32xf32>
    %56 = arith.mulf %54, %55 : vector<8x32xf32>
    %57 = vector.broadcast %6 : vector<1x32xf32> to vector<8x32xf32>
    %58 = arith.addf %56, %57 : vector<8x32xf32>
    %c0_28 = arith.constant 0 : index
    %c0_29 = arith.constant 0 : index
    %59 = vector.load %arg6[%c0_28, %c0_29] : memref<8x32xf32, #tpu.memory_space<vmem>>, vector<8x32xf32>
    %60 = vector.broadcast %5 : vector<1x32xf32> to vector<8x32xf32>
    %61 = arith.mulf %59, %60 : vector<8x32xf32>
    %62 = vector.broadcast %6 : vector<1x32xf32> to vector<8x32xf32>
    %63 = arith.addf %61, %62 : vector<8x32xf32>
    %64 = arith.mulf %20, %34 : vector<8x32xf32>
    %65 = arith.mulf %64, %48 : vector<8x32xf32>
    %66 = arith.mulf %20, %58 : vector<8x32xf32>
    %67 = arith.mulf %66, %63 : vector<8x32xf32>
    %68 = arith.addf %65, %67 : vector<8x32xf32>
    %69 = arith.mulf %53, %34 : vector<8x32xf32>
    %70 = arith.mulf %69, %63 : vector<8x32xf32>
    %71 = arith.addf %68, %70 : vector<8x32xf32>
    %72 = arith.mulf %53, %58 : vector<8x32xf32>
    %73 = arith.mulf %72, %48 : vector<8x32xf32>
    %74 = arith.subf %71, %73 : vector<8x32xf32>
    %cst_30 = arith.constant 1.000000e+00 : f32
    %75 = vector.broadcast %cst_30 : f32 to vector<1x32xf32>
    %cst_31 = arith.constant dense<0.000000e+00> : vector<1x8xf32>
    %76 = tpu.matmul %75, %74, %cst_31 {dimension_numbers = #tpu.dot_dimension_numbers<[1], [1], [0], [0], [0, 0, 1, 0], [], []>} : vector<1x32xf32>, vector<8x32xf32>, vector<1x8xf32> -> vector<1x8xf32>
    %77 = arith.negf %76 : vector<1x8xf32>
    %78 = math.exp %77 : vector<1x8xf32>
    %cst_32 = arith.constant 1.000000e+00 : f32
    %79 = vector.broadcast %cst_32 : f32 to vector<1x8xf32>
    %80 = arith.addf %79, %78 : vector<1x8xf32>
    %81 = arith.divf %79, %80 : vector<1x8xf32>
    %c0_33 = arith.constant 0 : index
    %c0_34 = arith.constant 0 : index
    %82 = vector.load %arg11[%c0_33, %c0_34] : memref<1x8xf32, #tpu.memory_space<vmem>>, vector<1x8xf32>
    tpu.vector_store %arg11[%c0_33, %c0_34], %81 {strides = array<i32>} : memref<1x8xf32, #tpu.memory_space<vmem>>, vector<1x8xf32>,
    return
  }
  func.func @transform_0(%arg0: i32) -> (i32, i32) {
    %c0_i32 = arith.constant 0 : i32
    %c0_i32_0 = arith.constant 0 : i32
    return %arg0, %c0_i32 : i32, i32
  }
  func.func @transform_1(%arg0: i32) -> (i32, i32) {
    %c0_i32 = arith.constant 0 : i32
    %c0_i32_0 = arith.constant 0 : i32
    return %arg0, %c0_i32 : i32, i32
  }
  func.func @transform_2(%arg0: i32) -> (i32, i32) {
    %c0_i32 = arith.constant 0 : i32
    %c0_i32_0 = arith.constant 0 : i32
    return %arg0, %c0_i32 : i32, i32
  }
  func.func @transform_3(%arg0: i32) -> (i32, i32) {
    %c0_i32 = arith.constant 0 : i32
    %c0_i32_0 = arith.constant 0 : i32
    return %arg0, %c0_i32 : i32, i32
  }
  func.func @transform_4(%arg0: i32) -> (i32, i32) {
    %c0_i32 = arith.constant 0 : i32
    %c0_i32_0 = arith.constant 0 : i32
    return %arg0, %c0_i32 : i32, i32
  }
  func.func @transform_5(%arg0: i32) -> (i32, i32) {
    %c0_i32 = arith.constant 0 : i32
    %c0_i32_0 = arith.constant 0 : i32
    return %arg0, %c0_i32 : i32, i32
  }
  func.func @transform_6(%arg0: i32) -> (i32, i32) {
    %c0_i32 = arith.constant 0 : i32
    %c0_i32_0 = arith.constant 0 : i32
    %c0_i32_1 = arith.constant 0 : i32
    return %c0_i32, %c0_i32_0 : i32, i32
  }
  func.func @transform_7(%arg0: i32) -> (i32, i32) {
    %c0_i32 = arith.constant 0 : i32
    %c0_i32_0 = arith.constant 0 : i32
    %c0_i32_1 = arith.constant 0 : i32
    return %c0_i32, %c0_i32_0 : i32, i32
  }
  func.func @transform_8(%arg0: i32) -> (i32, i32) {
    %c0_i32 = arith.constant 0 : i32
    %c0_i32_0 = arith.constant 0 : i32
    %c0_i32_1 = arith.constant 0 : i32
    return %c0_i32, %c0_i32_0 : i32, i32
  }
  func.func @transform_9(%arg0: i32) -> (i32, i32) {
    %c0_i32 = arith.constant 0 : i32
    %c0_i32_0 = arith.constant 0 : i32
    %c0_i32_1 = arith.constant 0 : i32
    return %c0_i32, %c0_i32_0 : i32, i32
  }
  func.func @transform_10(%arg0: i32) -> (i32, i32) {
    %c0_i32 = arith.constant 0 : i32
    %c0_i32_0 = arith.constant 0 : i32
    return %c0_i32, %arg0 : i32, i32
  }
}

</mosaic_0001>

<bundles_post_ra>
// kernel: tpu_custom_call.1
= control target key start
LH: loop header
LB: loop body
LE: loop exit
PB: predicated region body
PF: predicated region fallthrough
CT: control target
= control target key end

     0   :  { %15 = vsyncpa [#allocation3], 0  ;;  %s844_s0 = inlined_call_operand.hbm [shape: f32[8,32], index: 0, kind: input, shape index: {}]   ;;  %s845_s1 = inlined_call_operand.hbm [shape: f32[8,32], index: 1, kind: input, shape index: {}]   ;;  %s846_s2 = inlined_call_operand.hbm [shape: f32[8,32], index: 2, kind: input, shape index: {}]   ;;  %s847_s3 = inlined_call_operand.hbm [shape: f32[8,32], index: 3, kind: input, shape index: {}]   ;;  %s848_s4 = inlined_call_operand.hbm [shape: f32[8,32], index: 4, kind: input, shape index: {}]   ;;  %s849_s5 = inlined_call_operand.hbm [shape: f32[8,32], index: 5, kind: input, shape index: {}]   ;;  %s850_s6 = inlined_call_operand.hbm [shape: f32[32,32], index: 6, kind: input, shape index: {}]   ;;  %s851_s7 = inlined_call_operand.hbm [shape: f32[32,32], index: 7, kind: input, shape index: {}]   ;;  %s852_s8 = inlined_call_operand.hbm [shape: f32[32,32], index: 8, kind: input, shape index: {}]   ;;  %s853_s9 = inlined_call_operand.vmem [shape: f32[8,32], index: 9, kind: input, shape index: {}]   ;;  %s854_s10 = inlined_call_operand.hbm [shape: f32[1,8], index: 10, kind: output, shape index: {}]  }
   0x1   :  { %16 = vsyncpa [#allocation6], 0 }
   0x2   :  { %17 = vsyncpa [#allocation9], 0 }
   0x3   :  { %18 = vsyncpa [#allocation12], 0 }
   0x4   :  { %19 = vsyncpa [#allocation15], 0  ;;  %s37_s15 = sshll.u32 %s845_s1, 4  ;;  %s38_s15 = int_to_ptr.hbm [resolvable:$true] %s37_s15 }
   0x5   :  { %20 = vsyncpa [#allocation4], 0  ;;  %s711_s16 = smov [#allocation5]   ;;  %s59_s20 = sshll.u32 %s847_s3, 4  ;;  %s60_s20 = int_to_ptr.hbm [resolvable:$true] %s59_s20 }
   0x6   :  { %s39_s17 = sshll.u32 %s711_s16, 4  ;;  %s712_s21 = smov [#allocation8]   ;;  %s40_s17 = int_to_ptr.vmem [resolvable:$true] %s39_s17 }
   0x7   :  { %42 = dma.hbm_to_vmem [thread:$0]  %s38_s15, 128, %s40_s17, [#allocation6]  }
   0x8   :  { %s61_s22 = sshll.u32 %s712_s21, 4  ;;  %s81_s25 = sshll.u32 %s849_s5, 4  ;;  %s62_s22 = int_to_ptr.vmem [resolvable:$true] %s61_s22  ;;  %s82_s25 = int_to_ptr.hbm [resolvable:$true] %s81_s25 }
   0x9   :  { %64 = dma.hbm_to_vmem [thread:$0]  %s60_s20, 128, %s62_s22, [#allocation9]  }
   0xa   :  { %s713_s1 = smov [#allocation11]   ;;  %s104_s29 = sshll.u32 %s851_s7, 4  ;;  %s105_s29 = int_to_ptr.hbm [resolvable:$true] %s104_s29 }
   0xb   :  { %s83_s26 = sshll.u32 %s713_s1, 4  ;;  %s714_s3 = smov [#allocation14]   ;;  %s84_s26 = int_to_ptr.vmem [resolvable:$true] %s83_s26 }
   0xc   :  { %86 = dma.hbm_to_vmem [thread:$0]  %s82_s25, 128, %s84_s26, [#allocation12]  }
   0xd   :  { %s106_s30 = sshll.u32 %s714_s3, 4  ;;  %s26_s13 = sshll.u32 %s844_s0, 4  ;;  %s107_s30 = int_to_ptr.vmem [resolvable:$true] %s106_s30  ;;  %s27_s13 = int_to_ptr.hbm [resolvable:$true] %s26_s13 }
   0xe   :  { %s715_s5 = smov 128   ;;  %s716_s14 = smov 8  }
   0xf   :  { %112 = dma.hbm_to_vmem [thread:$0]  %s105_s29, 512, %s107_s30, [#allocation15], %s715_s5, %s715_s5, %s716_s14  }
  0x10   :  { %s48_s7 = sshll.u32 %s846_s2, 4  ;;  %s717_s17 = smov [#allocation2]   ;;  %s49_s7 = int_to_ptr.hbm [resolvable:$true] %s48_s7 }
  0x11   :  { %s28_s18 = sshll.u32 %s717_s17, 4  ;;  %s718_s19 = smov [#allocation7]   ;;  %s29_s18 = int_to_ptr.vmem [resolvable:$true] %s28_s18 }
  0x12   :  { %31 = dma.hbm_to_vmem [thread:$0]  %s27_s13, 128, %s29_s18, [#allocation3]  }
  0x13   :  { %s50_s20 = sshll.u32 %s718_s19, 4  ;;  %s70_s22 = sshll.u32 %s848_s4, 4  ;;  %s51_s20 = int_to_ptr.vmem [resolvable:$true] %s50_s20  ;;  %s71_s22 = int_to_ptr.hbm [resolvable:$true] %s70_s22 }
  0x14   :  { %53 = dma.hbm_to_vmem [thread:$0]  %s49_s7, 128, %s51_s20, [#allocation6]  }
  0x15   :  { %s91_s25 = sshll.u32 %s850_s6, 4  ;;  %s719_s1 = smov [#allocation10]   ;;  %s92_s25 = int_to_ptr.hbm [resolvable:$true] %s91_s25 }
  0x16   :  { %s72_s2 = sshll.u32 %s719_s1, 4  ;;  %s720_s26 = smov [#allocation13]   ;;  %s73_s2 = int_to_ptr.vmem [resolvable:$true] %s72_s2 }
  0x17   :  { %75 = dma.hbm_to_vmem [thread:$0]  %s71_s22, 128, %s73_s2, [#allocation9]  }
  0x18   :  { %s93_s27 = sshll.u32 %s720_s26, 4  ;;  %s117_s3 = sshll.u32 %s852_s8, 4  ;;  %s94_s27 = int_to_ptr.vmem [resolvable:$true] %s93_s27  ;;  %s118_s3 = int_to_ptr.hbm [resolvable:$true] %s117_s3 }
  0x19   :  { %99 = dma.hbm_to_vmem [thread:$0]  %s92_s25, 512, %s94_s27, [#allocation12], %s715_s5, %s715_s5, %s716_s14  }
  0x1a   :  { %s721_s4 = smov [#allocation16]  }
  0x1b   :  { %s119_s30 = sshll.u32 %s721_s4, 4  ;;  %s120_s30 = int_to_ptr.vmem [resolvable:$true] %s119_s30 }
  0x1c   :  { %125 = dma.hbm_to_vmem [thread:$0]  %s118_s3, 512, %s120_s30, [#allocation15], %s715_s5, %s715_s5, %s716_s14  }
  0x1d   :  { %699 = dma.done.wait [#allocation3], 128  }
  0x1e   :  { %700 = vsyncadd [#allocation3], 4294967168 }
  0x1f   :  { %701 = dma.done.wait [#allocation6], 256  }
  0x20   :  { %702 = vsyncadd [#allocation6], 4294967040 }
  0x21   :  { %703 = dma.done.wait [#allocation9], 256  }
  0x22   :  { %704 = vsyncadd [#allocation9], 4294967040 }
  0x23   :  { %705 = dma.done.wait [#allocation12], 640  }
  0x24   :  { %706 = vsyncadd [#allocation12], 4294966656 }
  0x25   :  { %707 = dma.done.wait [#allocation15], 1024  }
  0x26   :  { %708 = vsyncadd [#allocation15], 4294966272  ;;  %v175_v0 = vld [vmem:[#allocation13 + $0x18] sm:$0xff]  ;;  %v174_v3 = vld [vmem:[#allocation13 + $0x10] sm:$0xff]  ;;  %vm177_vm0 = vcmask 261120   ;;  %s400_s23 = sshll.u32 %s854_s10, 4  ;;  %s401_s23 = int_to_ptr.hbm [resolvable:$true] %s400_s23 }
  0x27   :  { %v228_v1 = vld [vmem:[#allocation14 + $0x18] sm:$0xff]  ;;  %193 = vmatpush.msra.mxu0 %v175_v0  ;;  %v227_v4 = vld [vmem:[#allocation14 + $0x10] sm:$0xff]  ;;  %v173_v6 = vld [vmem:[#allocation13 + $0x8] sm:$0xff] }
  0x28   :  { %v278_v2 = vld [vmem:[#allocation16 + $0x18] sm:$0xff]  ;;  %245 = vmatpush.msra.mxu1 %v228_v1  ;;  %v277_v5 = vld [vmem:[#allocation16 + $0x10] sm:$0xff]  ;;  %v226_v7 = vld [vmem:[#allocation14 + $0x8] sm:$0xff] }
  0x29   :  { %295 = vmatpush.msra.mxu2 %v278_v2  ;;  %194 = vmatpush.msra.mxu0 %v174_v3  ;;  %v276_v8 = vld [vmem:[#allocation16 + $0x8] sm:$0xff]  ;;  %v172_v9 = vld [vmem:[#allocation13] sm:$0xff]  ;;  %v171_v12 = vld [vmem:[#allocation2] sm:$0xff] }
  0x2a   :  { %246 = vmatpush.msra.mxu1 %v227_v4  ;;  %v225_v10 = vld [vmem:[#allocation14] sm:$0xff]  ;;  %v224_v13 = vld [vmem:[#allocation5] sm:$0xff]  ;;  %v436_v15 = vld [vmem:[%s853_s9] ss:$0 sm:$0xff] }
  0x2b   :  { %296 = vmatpush.msra.mxu2 %v277_v5  ;;  %v275_v11 = vld [vmem:[#allocation16] sm:$0xff]  ;;  %195 = vmatpush.msra.mxu0 %v173_v6  ;;  %v437_v16 = vld [vmem:[%s853_s9 + $0x1] ss:$0 sm:$0xff]  ;;  %v438_v23 = vld [vmem:[%s853_s9 + $0x2] ss:$0 sm:$0xff] }
  0x2c   :  { %247 = vmatpush.msra.mxu1 %v226_v7  ;;  %v274_v14 = vld [vmem:[#allocation7] sm:$0xff]  ;;  %v441_v43 = vld [vmem:[%s853_s9 + $0x5] ss:$0 sm:$0xff]  ;;  %v439_v49 = vld [vmem:[%s853_s9 + $0x3] ss:$0 sm:$0xff] }
  0x2d   :  { %297 = vmatpush.msra.mxu2 %v276_v8  ;;  %196 = vmatpush.msra.mxu0 %v172_v9  ;;  %v329_v46 = vld [vmem:[#allocation10] sm:$0xff]  ;;  %v324_v53 = vld [vmem:[#allocation8] sm:$0xff]  ;;  %v332_v2 = vld [vmem:[#allocation11] sm:$0xff] }
  0x2e   :  { %248 = vmatpush.msra.mxu1 %v225_v10  ;;  %414 = vmatmul.msk.f32.vlgmr.msra.gmra.mxu0 %vm177_vm0, %v171_v12  ;;  %v442_v56 = vld [vmem:[%s853_s9 + $0x6] ss:$0 sm:$0xff]  ;;  %v330_v57 = vmul.f32 %v441_v43, %v329_v46  ;;  %v440_v60 = vld [vmem:[%s853_s9 + $0x4] ss:$0 sm:$0xff]  ;;  %v326_v1 = vmul.f32 %v441_v43, %v324_v53  ;;  %v333_v9 = vmul.f32 %v441_v43, %v332_v2  ;;  %s723_s9 = smov [#allocation17]  }
  0x2f   :  { %298 = vmatpush.msra.mxu2 %v275_v11  ;;  %416 = vmatmul.msk.f32.vlgmr.msra.gmra.mxu1 %vm177_vm0, %v224_v13  ;;  %s398_s0 = sshll.u32 %s723_s9, 4  ;;  %s399_s0 = int_to_ptr.vmem [resolvable:$true] %s398_s0 }
  0x30   :  { %418 = vmatmul.msk.f32.vlgmr.msra.gmra.mxu2 %vm177_vm0, %v274_v14  ;;  %v331_v6 = vadd.f32 %v442_v56, %v330_v57  ;;  %v328_v13 = vadd.f32 %v442_v56, %v326_v1 }
  0xab   :  { %v198_v17 = vpop.f32.mrf.mxu0 }
  0xac   :  { %v199_v18 = vadd.f32 %v436_v15, %v198_v17  ;;  %v250_v19 = vpop.f32.mrf.mxu1 }
  0xad   :  { %v251_v20 = vadd.f32 %v437_v16, %v250_v19  ;;  %v334_v16 = vadd.f32 %v442_v56, %v333_v9 }
  0xae   :  { %v415_v21 = vmul.f32 -1.442695, %v199_v18 }
  0xaf   :  { %v417_v22 = vmul.f32 -1.442695, %v251_v20 }
  0xb0   :  { %443 = vpow2.f32 %v415_v21 }
  0xb1   :  { %445 = vpow2.f32 %v417_v22 }
  0xb3   :  { %v300_v24 = vpop.f32.mrf.mxu2 }
  0xb4   :  { %v301_v25 = vadd.f32 %v438_v23, %v300_v24  ;;  %v343_v23 = vmul.f32 %v331_v6, %v328_v13 }
  0xb6   :  { %v419_v26 = vmul.f32 -1.442695, %v301_v25  ;;  %v444_v27 = vpop.eup %443 }
  0xb7   :  { %v446_v28 = vpop.eup %445  ;;  %v204_v29 = vadd.f32 1.0, %v444_v27 }
  0xb8   :  { %447 = vpow2.f32 %v419_v26  ;;  %v256_v30 = vadd.f32 1.0, %v446_v28 }
  0xb9   :  { %449 = vrcp.f32 %v204_v29  ;;  %v216_v38 = vand.u32 2147483648, %v204_v29  ;;  %v214_v41 = vand.u32 2147483647, %v204_v29  ;;  %vm210_vm3 = vweird.f32 %v204_v29 }
  0xba   :  { %451 = vrcp.f32 %v256_v30  ;;  %v268_v42 = vand.u32 2147483648, %v256_v30  ;;  %v266_v45 = vand.u32 2147483647, %v256_v30  ;;  %vm262_vm5 = vweird.f32 %v256_v30 }
  0xbb   :  { %v217_v50 = vor.u32 1.1754944e-38, %v216_v38  ;;  %vm215_vm6 = vcmp.eq.f32.partialorder %v214_v41, 8.507059e+37 }
  0xbc   :  { %v269_v54 = vor.u32 1.1754944e-38, %v268_v42  ;;  %vm267_vm8 = vcmp.eq.f32.partialorder %v266_v45, 8.507059e+37 }
  0xbe   :  { %v448_v31 = vpop.eup %447 }
  0xbf   :  { %v306_v32 = vadd.f32 1.0, %v448_v31  ;;  %v450_v33 = vpop.eup %449 }
  0xc0   :  { %v452_v34 = vpop.eup %451  ;;  %v206_v35 = vmul.f32 %v450_v33, %v204_v29  ;;  %vm211_vm1 = vweird.f32 %v450_v33  ;;  %v722_v29 = vmov 1.0  }
  0xc1   :  { %453 = vrcp.f32 %v306_v32  ;;  %v258_v36 = vmul.f32 %v452_v34, %v256_v30  ;;  %vm263_vm2 = vweird.f32 %v452_v34  ;;  %vm212_vm4 = vmor %vm210_vm3, %vm211_vm1  ;;  %v318_v0 = vand.u32 2147483648, %v306_v32 }
  0xc2   :  { %v207_v37 = vsub.f32 1.0, %v206_v35  ;;  %vm264_vm7 = vmor %vm262_vm5, %vm263_vm2  ;;  %v316_v5 = vand.u32 2147483647, %v306_v32  ;;  %vm312_vm10 = vweird.f32 %v306_v32 }
  0xc3   :  { %v259_v39 = vsub.f32 1.0, %v258_v36  ;;  %v319_v10 = vor.u32 1.1754944e-38, %v318_v0 }
  0xc4   :  { %v208_v40 = vmul.f32 %v450_v33, %v207_v37  ;;  %vm317_vm12 = vcmp.eq.f32.partialorder %v316_v5, 8.507059e+37 }
  0xc5   :  { %v260_v44 = vmul.f32 %v452_v34, %v259_v39 }
  0xc6   :  { %v209_v48 = vadd.f32 %v450_v33, %v208_v40 }
  0xc7   :  { %v454_v47 = vpop.eup %453  ;;  %v261_v52 = vadd.f32 %v452_v34, %v260_v44 }
  0xc8   :  { %v308_v51 = vmul.f32 %v454_v47, %v306_v32  ;;  %v213_v55 = vsel %vm212_vm4, %v450_v33, %v209_v48  ;;  %vm313_vm9 = vweird.f32 %v454_v47 }
  0xc9   :  { %v218_v59 = vsel %vm215_vm6, %v217_v50, %v213_v55  ;;  %v265_v61 = vsel %vm264_vm7, %v452_v34, %v261_v52  ;;  %vm314_vm11 = vmor %vm312_vm10, %vm313_vm9 }
  0xca   :  { %v309_v58 = vsub.f32 1.0, %v308_v51  ;;  %v221_v62 = vmul.f32 %v439_v49, %v218_v59  ;;  %v270_v63 = vsel %vm267_vm8, %v269_v54, %v265_v61 }
  0xcb   :  { %v272_v3 = vmul.f32 %v439_v49, %v270_v63 }
  0xcc   :  { %v310_v4 = vmul.f32 %v454_v47, %v309_v58  ;;  %v223_v7 = vadd.f32 %v440_v60, %v221_v62 }
  0xcd   :  { %v273_v11 = vadd.f32 %v440_v60, %v272_v3 }
  0xce   :  { %v311_v8 = vadd.f32 %v454_v47, %v310_v4  ;;  %v337_v17 = vmul.f32 %v331_v6, %v223_v7 }
  0xcf   :  { %v335_v19 = vmul.f32 %v273_v11, %v223_v7  ;;  %v340_v20 = vmul.f32 %v328_v13, %v273_v11 }
  0xd0   :  { %v315_v12 = vsel %vm314_vm11, %v454_v47, %v311_v8  ;;  %v338_v22 = vmul.f32 %v337_v17, %v334_v16 }
  0xd1   :  { %v320_v14 = vsel %vm317_vm12, %v319_v10, %v315_v12  ;;  %v341_v25 = vmul.f32 %v340_v20, %v334_v16 }
  0xd2   :  { %v322_v15 = vmul.f32 %v439_v49, %v320_v14 }
  0xd4   :  { %v323_v18 = vadd.f32 %v440_v60, %v322_v15 }
  0xd6   :  { %v336_v21 = vmul.f32 %v335_v19, %v323_v18  ;;  %v344_v27 = vmul.f32 %v343_v23, %v323_v18 }
  0xd8   :  { %v339_v24 = vadd.f32 %v338_v22, %v336_v21 }
  0xda   :  { %v342_v26 = vadd.f32 %v341_v25, %v339_v24 }
  0xdc   :  { %v345_v28 = vsub.f32 %v342_v26, %v344_v27 }
  0xde   :  { %420 = vmatpush.xpose.msk.msra.mxu3 %vm177_vm0, %v345_v28 }
  0xe1   :  { %421 = vmatmul.msk.f32.vlgmr.msra.gmra.mxu3 %vm177_vm0, %v722_v29  ;;  %vm391_vm0 = vcmask 57344  }
 0x164   :  { %v369_v30 = vpop.f32.mrf.mxu3 }
 0x165   :  { %v422_v31 = vmul.f32 -1.442695, %v369_v30 }
 0x167   :  { %455 = vpow2.f32 %v422_v31 }
 0x16d   :  { %v456_v32 = vpop.eup %455 }
 0x16e   :  { %v375_v33 = vadd.f32 1.0, %v456_v32 }
 0x170   :  { %457 = vrcp.f32 %v375_v33  ;;  %v387_v37 = vand.u32 2147483648, %v375_v33  ;;  %v385_v39 = vand.u32 2147483647, %v375_v33  ;;  %vm381_vm14 = vweird.f32 %v375_v33 }
 0x172   :  { %v388_v41 = vor.u32 1.1754944e-38, %v387_v37  ;;  %vm386_vm1 = vcmp.eq.f32.partialorder %v385_v39, 8.507059e+37 }
 0x176   :  { %v458_v34 = vpop.eup %457 }
 0x177   :  { %v377_v35 = vmul.f32 %v458_v34, %v375_v33  ;;  %vm382_vm13 = vweird.f32 %v458_v34 }
 0x178   :  { %vm383_vm15 = vmor %vm381_vm14, %vm382_vm13 }
 0x179   :  { %v378_v36 = vsub.f32 1.0, %v377_v35 }
 0x17b   :  { %v379_v38 = vmul.f32 %v458_v34, %v378_v36 }
 0x17d   :  { %v380_v40 = vadd.f32 %v458_v34, %v379_v38 }
 0x17f   :  { %v384_v42 = vsel %vm383_vm15, %v458_v34, %v380_v40 }
 0x180   :  { %v389_v43 = vsel %vm386_vm1, %v388_v41, %v384_v42 }
 0x181   :  { %392 = vst.msk [vmem:[#allocation17] sm:$0x1] %vm391_vm0, %v389_v43 }
 0x182   :  { %403 = dma.vmem_to_hbm [thread:$0]  %s399_s0, 16, %s401_s23, [#allocation4]  }
 0x183   :  { %709 = dma.done.wait [#allocation4], 16  }
 0x184   :  { %710 = vsyncadd [#allocation4], 4294967280 }
 0x185   :  { %408 = vsyncpa [#allocation3], 1 }
 0x186   :  { %409 = vsyncpa [#allocation6], 1 }
 0x187   :  { %410 = vsyncpa [#allocation9], 1 }
 0x188   :  { %411 = vsyncpa [#allocation12], 1 }
 0x189   :  { %412 = vsyncpa [#allocation15], 1 }
 0x18a   :  { %413 = vsyncpa [#allocation4], 1 }

</bundles_post_ra>
